<compile_context>
chip_gen: v6e
topology: v6e:2x2x1
jax: 0.10.0
libtpu: 0.0.40
codegen_flags: <defaults>
</compile_context>

<pallas_src>
import jax
import jax.numpy as jnp
from jax import lax
from jax.experimental import pallas as pl
from jax.experimental.pallas import tpu as pltpu


def mlp_kernel(x_ref, w1_ref, b1_ref, w2_ref, b2_ref, w3_ref, b3_ref,
               w4_ref, b4_ref, oT_ref):
    # Entire forward pass in VMEM: 4 MXU matmuls + 3 lane-dense tanh (EUP).
    # x arrives in native (tile_b, in_dim) layout; the first matmul contracts
    # its feature axis directly (A @ B^T form), so no wrapper-side transpose
    # or extra HBM pass is needed.
    x = x_ref[...]                                                  # (TILE_B, in)
    h = jnp.tanh(lax.dot_general(w1_ref[...], x, (((1,), (1,)), ((), ())),
                                 preferred_element_type=jnp.float32)
                 + b1_ref[...])                                     # (h1, TILE_B)
    h = jnp.tanh(jnp.dot(w2_ref[...], h,
                         preferred_element_type=jnp.float32) + b2_ref[...])
    h = jnp.tanh(jnp.dot(w3_ref[...], h,
                         preferred_element_type=jnp.float32) + b3_ref[...])
    # Final layer: (1, h3) x (h3, TILE_B) -> lane-dense (1, TILE_B) output.
    out = (jnp.dot(w4_ref[...], h,
                   preferred_element_type=jnp.float32) + b4_ref[...])
    oT_ref[...] = out.astype(oT_ref.dtype)


def _choose_tile_b(B, max_tile=2048):
    """Tile is a multiple of 256 (v6e/v7x MXU lane width), capped at max_tile.

    Small batches -> a single grid step (per-step overhead dominates here);
    larger batches -> >= 2 steps so v7x's 2 TensorCores both get work.
    """
    b256 = 256 * pl.cdiv(B, 256)
    if b256 <= 256:
        return b256
    return min(max_tile, max(256, ((b256 // 2) // 256) * 256))


def mlp_forward(x, params, *, tile_b=None):
    """x: (B, input_dim) f32.  params: w* in (out,in) layout, b* as (out,1)."""
    B, input_dim = x.shape
    w1, b1 = params["w1"], params["b1"]
    w2, b2 = params["w2"], params["b2"]
    w3, b3 = params["w3"], params["b3"]
    w4, b4 = params["w4"], params["b4"]
    h1, h2, h3 = w1.shape[0], w2.shape[0], w3.shape[0]

    if tile_b is None:
        tile_b = _choose_tile_b(B)
    n_tiles = pl.cdiv(B, tile_b)
    Bp = n_tiles * tile_b
    if Bp != B:
        # Single fused pad of the batch axis only (no transpose, no zeros+set).
        x = jnp.pad(x, ((0, Bp - B), (0, 0)))

    # Advisory cost so XLA can overlap this tiny custom call with its neighbors.
    flops = 2 * (input_dim * h1 + h1 * h2 + h2 * h3 + h3 * 1) * Bp
    transcendentals = (h1 + h2 + h3) * Bp
    weight_elems = sum(int(a.size) for a in (w1, b1, w2, b2, w3, b3, w4, b4))
    bytes_accessed = 4 * (input_dim * Bp + Bp + weight_elems)

    resident = lambda a: pl.BlockSpec(a.shape, lambda i: (0, 0))

    outT = pl.pallas_call(
        mlp_kernel,
        out_shape=jax.ShapeDtypeStruct((1, Bp), jnp.float32),
        grid=(n_tiles,),
        in_specs=[
            pl.BlockSpec((tile_b, input_dim), lambda i: (i, 0)),   # native x tile
            resident(w1), resident(b1),
            resident(w2), resident(b2),
            resident(w3), resident(b3),
            resident(w4), resident(b4),
        ],
        out_specs=pl.BlockSpec((1, tile_b), lambda i: (0, i)),     # lane-dense
        compiler_params=pltpu.CompilerParams(
            dimension_semantics=("parallel",),        # megacore sharding on v7x
            vmem_limit_bytes=16 * 1024 * 1024),       # tiny footprint, portable
        cost_estimate=pl.CostEstimate(
            flops=flops,
            transcendentals=transcendentals,
            bytes_accessed=bytes_accessed),
    )(x, w1, b1, w2, b2, w3, b3, w4, b4)

    return outT[:, :B].T                                           # (B, 1)


def init_params(key, input_dim, h1, h2, h3):
    """Deterministic init; weights in PyTorch layout (out_features, in_features)."""
    ks = jax.random.split(key, 8)

    def lin(kw, kb, fan_in, fan_out):
        bound = 1.0 / jnp.sqrt(jnp.float32(fan_in))
        w = jax.random.uniform(kw, (fan_out, fan_in), jnp.float32, -bound, bound)
        b = jax.random.uniform(kb, (fan_out, 1), jnp.float32, -bound, bound)
        return w, b

    w1, b1 = lin(ks[0], ks[1], input_dim, h1)
    w2, b2 = lin(ks[2], ks[3], h1, h2)
    w3, b3 = lin(ks[4], ks[5], h2, h3)
    w4, b4 = lin(ks[6], ks[7], h3, 1)
    return dict(w1=w1, b1=b1, w2=w2, b2=b2, w3=w3, b3=b3, w4=w4, b4=b4)


def mlp_reference(x, p):
    h = jnp.tanh(x @ p["w1"].T + p["b1"].T)
    h = jnp.tanh(h @ p["w2"].T + p["b2"].T)
    h = jnp.tanh(h @ p["w3"].T + p["b3"].T)
    return h @ p["w4"].T + p["b4"].T


if __name__ == "__main__":
    key = jax.random.PRNGKey(0)
    k_x, k_p = jax.random.split(key)

    # Small MLP-regression-like shapes; batch=200 exercises the pad path and
    # collapses to a single 256-wide grid step.
    batch, input_dim, h1, h2, h3 = 200, 16, 32, 32, 32
    x = jax.random.normal(k_x, (batch, input_dim), jnp.float32)
    params = init_params(k_p, input_dim, h1, h2, h3)

    out = mlp_forward(x, params)
    out = jax.block_until_ready(out)

    ref = mlp_reference(x, params)
    assert out.shape == (batch, 1), out.shape
    assert jnp.allclose(out, ref, atol=1e-4, rtol=1e-4), "mismatch vs reference"
    print("KERNEL_OK")
</pallas_src>

<mosaic_0001>
module attributes {stable_mosaic.version = 11 : i64} {
  func.func @mlp_kernel(%arg0: i32, %arg1: memref<256x16xf32, #tpu.memory_space<vmem>>, %arg2: memref<32x16xf32, #tpu.memory_space<vmem>>, %arg3: memref<32x1xf32, #tpu.memory_space<vmem>>, %arg4: memref<32x32xf32, #tpu.memory_space<vmem>>, %arg5: memref<32x1xf32, #tpu.memory_space<vmem>>, %arg6: memref<32x32xf32, #tpu.memory_space<vmem>>, %arg7: memref<32x1xf32, #tpu.memory_space<vmem>>, %arg8: memref<1x32xf32, #tpu.memory_space<vmem>>, %arg9: memref<1x1xf32, #tpu.memory_space<vmem>>, %arg10: memref<1x256xf32, #tpu.memory_space<vmem>>) attributes {dimension_semantics = [#tpu.dimension_semantics<parallel>], iteration_bounds = array<i64: 1>, scalar_prefetch = 0 : i64, scratch_operands = 0 : i64, tpu.core_type = #tpu.core_type<tc>, window_params = [{transform_indices = @transform_0, window_bounds = array<i64: 256, 16>}, {pipeline_mode = #tpu.pipeline_mode<synchronous>, transform_indices = @transform_1, window_bounds = array<i64: 32, 16>}, {pipeline_mode = #tpu.pipeline_mode<synchronous>, transform_indices = @transform_2, window_bounds = array<i64: 32, 1>}, {pipeline_mode = #tpu.pipeline_mode<synchronous>, transform_indices = @transform_3, window_bounds = array<i64: 32, 32>}, {pipeline_mode = #tpu.pipeline_mode<synchronous>, transform_indices = @transform_4, window_bounds = array<i64: 32, 1>}, {pipeline_mode = #tpu.pipeline_mode<synchronous>, transform_indices = @transform_5, window_bounds = array<i64: 32, 32>}, {pipeline_mode = #tpu.pipeline_mode<synchronous>, transform_indices = @transform_6, window_bounds = array<i64: 32, 1>}, {pipeline_mode = #tpu.pipeline_mode<synchronous>, transform_indices = @transform_7, window_bounds = array<i64: 1, 32>}, {pipeline_mode = #tpu.pipeline_mode<synchronous>, transform_indices = @transform_8, window_bounds = array<i64: 1, 1>}, {transform_indices = @transform_9, window_bounds = array<i64: 1, 256>}]} {
    %c0 = arith.constant 0 : index
    %c0_0 = arith.constant 0 : index
    %0 = vector.load %arg1[%c0, %c0_0] : memref<256x16xf32, #tpu.memory_space<vmem>>, vector<256x16xf32>
    %c0_1 = arith.constant 0 : index
    %c0_2 = arith.constant 0 : index
    %1 = vector.load %arg2[%c0_1, %c0_2] : memref<32x16xf32, #tpu.memory_space<vmem>>, vector<32x16xf32>
    %cst = arith.constant dense<0.000000e+00> : vector<32x256xf32>
    %2 = tpu.matmul %1, %0, %cst {dimension_numbers = #tpu.dot_dimension_numbers<[1], [1], [0], [0], [0, 0, 1, 0], [], []>} : vector<32x16xf32>, vector<256x16xf32>, vector<32x256xf32> -> vector<32x256xf32>
    %c0_3 = arith.constant 0 : index
    %c0_4 = arith.constant 0 : index
    %3 = vector.load %arg3[%c0_3, %c0_4] : memref<32x1xf32, #tpu.memory_space<vmem>>, vector<32x1xf32>
    %4 = vector.broadcast %3 : vector<32x1xf32> to vector<32x256xf32>
    %5 = arith.addf %2, %4 : vector<32x256xf32>
    %6 = math.tanh %5 : vector<32x256xf32>
    %c0_5 = arith.constant 0 : index
    %c0_6 = arith.constant 0 : index
    %7 = vector.load %arg4[%c0_5, %c0_6] : memref<32x32xf32, #tpu.memory_space<vmem>>, vector<32x32xf32>
    %cst_7 = arith.constant dense<0.000000e+00> : vector<32x256xf32>
    %8 = tpu.matmul %7, %6, %cst_7 {dimension_numbers = #tpu.dot_dimension_numbers<[1], [0], [0], [1], [0, 0, 1, 1], [], []>} : vector<32x32xf32>, vector<32x256xf32>, vector<32x256xf32> -> vector<32x256xf32>
    %c0_8 = arith.constant 0 : index
    %c0_9 = arith.constant 0 : index
    %9 = vector.load %arg5[%c0_8, %c0_9] : memref<32x1xf32, #tpu.memory_space<vmem>>, vector<32x1xf32>
    %10 = vector.broadcast %9 : vector<32x1xf32> to vector<32x256xf32>
    %11 = arith.addf %8, %10 : vector<32x256xf32>
    %12 = math.tanh %11 : vector<32x256xf32>
    %c0_10 = arith.constant 0 : index
    %c0_11 = arith.constant 0 : index
    %13 = vector.load %arg6[%c0_10, %c0_11] : memref<32x32xf32, #tpu.memory_space<vmem>>, vector<32x32xf32>
    %cst_12 = arith.constant dense<0.000000e+00> : vector<32x256xf32>
    %14 = tpu.matmul %13, %12, %cst_12 {dimension_numbers = #tpu.dot_dimension_numbers<[1], [0], [0], [1], [0, 0, 1, 1], [], []>} : vector<32x32xf32>, vector<32x256xf32>, vector<32x256xf32> -> vector<32x256xf32>
    %c0_13 = arith.constant 0 : index
    %c0_14 = arith.constant 0 : index
    %15 = vector.load %arg7[%c0_13, %c0_14] : memref<32x1xf32, #tpu.memory_space<vmem>>, vector<32x1xf32>
    %16 = vector.broadcast %15 : vector<32x1xf32> to vector<32x256xf32>
    %17 = arith.addf %14, %16 : vector<32x256xf32>
    %18 = math.tanh %17 : vector<32x256xf32>
    %c0_15 = arith.constant 0 : index
    %c0_16 = arith.constant 0 : index
    %19 = vector.load %arg8[%c0_15, %c0_16] : memref<1x32xf32, #tpu.memory_space<vmem>>, vector<1x32xf32>
    %cst_17 = arith.constant dense<0.000000e+00> : vector<1x256xf32>
    %20 = tpu.matmul %19, %18, %cst_17 {dimension_numbers = #tpu.dot_dimension_numbers<[1], [0], [0], [1], [0, 0, 1, 1], [], []>} : vector<1x32xf32>, vector<32x256xf32>, vector<1x256xf32> -> vector<1x256xf32>
    %c0_18 = arith.constant 0 : index
    %c0_19 = arith.constant 0 : index
    %21 = vector.load %arg9[%c0_18, %c0_19] : memref<1x1xf32, #tpu.memory_space<vmem>>, vector<1x1xf32>
    %22 = vector.broadcast %21 : vector<1x1xf32> to vector<1x256xf32>
    %23 = arith.addf %20, %22 : vector<1x256xf32>
    %c0_20 = arith.constant 0 : index
    %c0_21 = arith.constant 0 : index
    %24 = vector.load %arg10[%c0_20, %c0_21] : memref<1x256xf32, #tpu.memory_space<vmem>>, vector<1x256xf32>
    tpu.vector_store %arg10[%c0_20, %c0_21], %23 {strides = array<i32>} : memref<1x256xf32, #tpu.memory_space<vmem>>, vector<1x256xf32>,
    return
  }
  func.func @transform_0(%arg0: i32) -> (i32, i32) {
    %c0_i32 = arith.constant 0 : i32
    %c0_i32_0 = arith.constant 0 : i32
    return %arg0, %c0_i32 : i32, i32
  }
  func.func @transform_1(%arg0: i32) -> (i32, i32) {
    %c0_i32 = arith.constant 0 : i32
    %c0_i32_0 = arith.constant 0 : i32
    %c0_i32_1 = arith.constant 0 : i32
    return %c0_i32, %c0_i32_0 : i32, i32
  }
  func.func @transform_2(%arg0: i32) -> (i32, i32) {
    %c0_i32 = arith.constant 0 : i32
    %c0_i32_0 = arith.constant 0 : i32
    %c0_i32_1 = arith.constant 0 : i32
    return %c0_i32, %c0_i32_0 : i32, i32
  }
  func.func @transform_3(%arg0: i32) -> (i32, i32) {
    %c0_i32 = arith.constant 0 : i32
    %c0_i32_0 = arith.constant 0 : i32
    %c0_i32_1 = arith.constant 0 : i32
    return %c0_i32, %c0_i32_0 : i32, i32
  }
  func.func @transform_4(%arg0: i32) -> (i32, i32) {
    %c0_i32 = arith.constant 0 : i32
    %c0_i32_0 = arith.constant 0 : i32
    %c0_i32_1 = arith.constant 0 : i32
    return %c0_i32, %c0_i32_0 : i32, i32
  }
  func.func @transform_5(%arg0: i32) -> (i32, i32) {
    %c0_i32 = arith.constant 0 : i32
    %c0_i32_0 = arith.constant 0 : i32
    %c0_i32_1 = arith.constant 0 : i32
    return %c0_i32, %c0_i32_0 : i32, i32
  }
  func.func @transform_6(%arg0: i32) -> (i32, i32) {
    %c0_i32 = arith.constant 0 : i32
    %c0_i32_0 = arith.constant 0 : i32
    %c0_i32_1 = arith.constant 0 : i32
    return %c0_i32, %c0_i32_0 : i32, i32
  }
  func.func @transform_7(%arg0: i32) -> (i32, i32) {
    %c0_i32 = arith.constant 0 : i32
    %c0_i32_0 = arith.constant 0 : i32
    %c0_i32_1 = arith.constant 0 : i32
    return %c0_i32, %c0_i32_0 : i32, i32
  }
  func.func @transform_8(%arg0: i32) -> (i32, i32) {
    %c0_i32 = arith.constant 0 : i32
    %c0_i32_0 = arith.constant 0 : i32
    %c0_i32_1 = arith.constant 0 : i32
    return %c0_i32, %c0_i32_0 : i32, i32
  }
  func.func @transform_9(%arg0: i32) -> (i32, i32) {
    %c0_i32 = arith.constant 0 : i32
    %c0_i32_0 = arith.constant 0 : i32
    return %c0_i32, %arg0 : i32, i32
  }
}

</mosaic_0001>

<bundles_post_ra>
// kernel: tpu_custom_call.1
= control target key start
LH: loop header
LB: loop body
LE: loop exit
PB: predicated region body
PF: predicated region fallthrough
CT: control target
= control target key end

     0   :  { %s1152_s0 = inlined_call_operand.vmem [shape: f32[256,16], index: 0, kind: input, shape index: {}]   ;;  %s1153_s1 = inlined_call_operand.vmem [shape: f32[32,16], index: 1, kind: input, shape index: {}]   ;;  %s1154_s2 = inlined_call_operand.vmem [shape: f32[32,1], index: 2, kind: input, shape index: {}]   ;;  %s1155_s3 = inlined_call_operand.vmem [shape: f32[32,32], index: 3, kind: input, shape index: {}]   ;;  %s1156_s4 = inlined_call_operand.vmem [shape: f32[32,1], index: 4, kind: input, shape index: {}]   ;;  %s1157_s5 = inlined_call_operand.vmem [shape: f32[32,32], index: 5, kind: input, shape index: {}]   ;;  %s1158_s6 = inlined_call_operand.vmem [shape: f32[32,1], index: 6, kind: input, shape index: {}]   ;;  %s1159_s7 = inlined_call_operand.vmem [shape: f32[1,32], index: 7, kind: input, shape index: {}]   ;;  %s1160_s8 = inlined_call_operand.<no memory space> [shape: f32[1,1], index: 8, kind: input, shape index: {}]   ;;  %s1161_s9 = inlined_call_operand.hbm [shape: f32[1,256], index: 9, kind: output, shape index: {}]  }
   0x1   :  { %v14_v0 = vstv %s1160_s8 }
   0x2   :  { %15 = vst [vmem:[#allocation2] sm:$0x1] %v14_v0 }
   0x3   :  { %v66_v1 = vld [vmem:[%s1152_s0 + $0xf8] sm:$0xff]  ;;  %vm95_vm0 = vcmask 130048   ;;  %v65_v3 = vld [vmem:[%s1152_s0 + $0xf0] sm:$0xff]  ;;  %v859_v4 = vmov 0   ;;  %v64_v6 = vld [vmem:[%s1152_s0 + $0xe8] sm:$0xff] }
   0x4   :  { %v50_v2 = vld [vmem:[%s1152_s0 + $0x78] sm:$0xff]  ;;  %743 = vmatprep.subr.msk.mxu0 %vm95_vm0, %v66_v1  ;;  %787 = vset.pattern.permute.xlu0 %v859_v4  ;;  %v49_v5 = vld [vmem:[%s1152_s0 + $0x70] sm:$0xff]  ;;  %v48_v7 = vld [vmem:[%s1152_s0 + $0x68] sm:$0xff] }
   0x5   :  { %744 = vmatpush3.xpose.msk.msra.mxu0 %vm95_vm0, %v50_v2  ;;  %788 = vset.pattern.permute.xlu1 %v859_v4  ;;  %v63_v8 = vld [vmem:[%s1152_s0 + $0xe0] sm:$0xff]  ;;  %v62_v11 = vld [vmem:[%s1152_s0 + $0xd8] sm:$0xff]  ;;  %v72_v13 = vld [vmem:[%s1154_s2 + $0x8] sm:$0xff] }
   0x6   :  { %745 = vmatprep.subr.msk.mxu0 %vm95_vm0, %v65_v3  ;;  %v946_v9 = vld [vmem:[%s1153_s1] sm:$0xff]  ;;  %v74_v12 = vld [vmem:[%s1154_s2 + $0x18] sm:$0xff]  ;;  %v73_v14 = vld [vmem:[%s1154_s2 + $0x10] sm:$0xff]  ;;  %82 = vperm.xlu1 %788, %v72_v13  }
   0x7   :  { %v47_v10 = vld [vmem:[%s1152_s0 + $0x60] sm:$0xff]  ;;  %775 = vmatprep.mubr.msk.f32.mxu0 %vm95_vm0, %v946_v9  ;;  %92 = vperm.xlu0 %787, %v74_v12   ;;  %v46_v15 = vld [vmem:[%s1152_s0 + $0x58] sm:$0xff]  ;;  %v61_v17 = vld [vmem:[%s1152_s0 + $0xd0] sm:$0xff] }
   0x8   :  { %v71_v16 = vld [vmem:[%s1154_s2] sm:$0xff] }
   0x9   :  { %746 = vmatpush3.xpose.msk.msra.mxu0 %vm95_vm0, %v49_v5 }
   0xa   :  { %747 = vmatprep.subr.msk.mxu0 %vm95_vm0, %v64_v6 }
   0xd   :  { %748 = vmatpush3.xpose.msk.msra.mxu0 %vm95_vm0, %v48_v7 }
   0xe   :  { %749 = vmatprep.subr.msk.mxu0 %vm95_vm0, %v63_v8 }
  0x11   :  { %750 = vmatpush3.xpose.msk.msra.mxu0 %vm95_vm0, %v47_v10 }
  0x12   :  { %751 = vmatprep.subr.msk.mxu0 %vm95_vm0, %v62_v11 }
  0x13   :  { %16 = vsyncpa [#allocation4], 0  ;;  %87 = vperm.xlu0 %787, %v73_v14   ;;  %v308_v18 = vld [vmem:[%s1156_s4 + $0x18] sm:$0xff]  ;;  %77 = vperm.xlu1 %788, %v71_v16   ;;  %v45_v19 = vld [vmem:[%s1152_s0 + $0x50] sm:$0xff]  ;;  %v860_v51 = vmov 0.0   ;;  %vm329_vm1 = vcmask 261120  }
  0x14   :  { %v307_v20 = vld [vmem:[%s1156_s4 + $0x10] sm:$0xff]  ;;  %v60_v21 = vld [vmem:[%s1152_s0 + $0xc8] sm:$0xff]  ;;  %v305_v24 = vld [vmem:[%s1156_s4] sm:$0xff]  ;;  %406 = vmatprep.mubr.f32.mxu1 %v860_v51 }
  0x15   :  { %752 = vmatpush3.xpose.msk.msra.mxu0 %vm95_vm0, %v46_v15  ;;  %v306_v22 = vld [vmem:[%s1156_s4 + $0x8] sm:$0xff]  ;;  %v59_v25 = vld [vmem:[%s1152_s0 + $0xc0] sm:$0xff]  ;;  %v446_v26 = vld [vmem:[%s1158_s6 + $0x18] sm:$0xff] }
  0x16   :  { %753 = vmatprep.subr.msk.mxu0 %vm95_vm0, %v61_v17  ;;  %v44_v23 = vld [vmem:[%s1152_s0 + $0x48] sm:$0xff]  ;;  %v43_v27 = vld [vmem:[%s1152_s0 + $0x40] sm:$0xff]  ;;  %v445_v28 = vld [vmem:[%s1158_s6 + $0x10] sm:$0xff] }
  0x17   :  { %326 = vperm.xlu0 %787, %v308_v18   ;;  %321 = vperm.xlu1 %788, %v307_v20   ;;  %v58_v29 = vld [vmem:[%s1152_s0 + $0xb8] sm:$0xff]  ;;  %v444_v30 = vld [vmem:[%s1158_s6 + $0x8] sm:$0xff]  ;;  %v443_v32 = vld [vmem:[%s1158_s6] sm:$0xff] }
  0x18   :  { %v42_v31 = vld [vmem:[%s1152_s0 + $0x38] sm:$0xff]  ;;  %v57_v33 = vld [vmem:[%s1152_s0 + $0xb0] sm:$0xff]  ;;  %v577_v34 = vld [vmem:[#allocation2] sm:$0x1] }
  0x19   :  { %754 = vmatpush3.xpose.msk.msra.mxu0 %vm95_vm0, %v45_v19  ;;  %v41_v35 = vld [vmem:[%s1152_s0 + $0x30] sm:$0xff]  ;;  %v56_v36 = vld [vmem:[%s1152_s0 + $0xa8] sm:$0xff]  ;;  %v55_v38 = vld [vmem:[%s1152_s0 + $0xa0] sm:$0xff] }
  0x1a   :  { %755 = vmatprep.subr.msk.mxu0 %vm95_vm0, %v60_v21  ;;  %v40_v37 = vld [vmem:[%s1152_s0 + $0x28] sm:$0xff]  ;;  %v39_v39 = vld [vmem:[%s1152_s0 + $0x20] sm:$0xff]  ;;  %v54_v40 = vld [vmem:[%s1152_s0 + $0x98] sm:$0xff] }
  0x1b   :  { %316 = vperm.xlu0 %787, %v306_v22   ;;  %311 = vperm.xlu1 %788, %v305_v24   ;;  %v38_v41 = vld [vmem:[%s1152_s0 + $0x18] sm:$0xff]  ;;  %v53_v42 = vld [vmem:[%s1152_s0 + $0x90] sm:$0xff]  ;;  %v52_v44 = vld [vmem:[%s1152_s0 + $0x88] sm:$0xff] }
  0x1c   :  { %v37_v43 = vld [vmem:[%s1152_s0 + $0x10] sm:$0xff]  ;;  %v36_v45 = vld [vmem:[%s1152_s0 + $0x8] sm:$0xff]  ;;  %v51_v46 = vld [vmem:[%s1152_s0 + $0x80] sm:$0xff] }
  0x1d   :  { %756 = vmatpush3.xpose.msk.msra.mxu0 %vm95_vm0, %v44_v23  ;;  %v35_v47 = vld [vmem:[%s1152_s0] sm:$0xff]  ;;  %v68_v48 = vld [vmem:[%s1153_s1 + $0x8] sm:$0xff]  ;;  %v69_v49 = vld [vmem:[%s1153_s1 + $0x10] sm:$0xff] }
  0x1e   :  { %757 = vmatprep.subr.msk.mxu0 %vm95_vm0, %v59_v25  ;;  %v70_v50 = vld [vmem:[%s1153_s1 + $0x18] sm:$0xff]  ;;  %v301_v15 = vld [vmem:[%s1155_s3] sm:$0xff]  ;;  %v302_v17 = vld [vmem:[%s1155_s3 + $0x8] sm:$0xff] }
  0x1f   :  { %464 = vperm.xlu0 %787, %v446_v26   ;;  %459 = vperm.xlu1 %788, %v445_v28   ;;  %v303_v18 = vld [vmem:[%s1155_s3 + $0x10] sm:$0xff]  ;;  %v304_v19 = vld [vmem:[%s1155_s3 + $0x18] sm:$0xff] }
  0x21   :  { %758 = vmatpush3.xpose.msk.msra.mxu0 %vm95_vm0, %v43_v27 }
  0x22   :  { %759 = vmatprep.subr.msk.mxu0 %vm95_vm0, %v58_v29 }
  0x23   :  { %454 = vperm.xlu0 %787, %v444_v30   ;;  %449 = vperm.xlu1 %788, %v443_v32  }
  0x25   :  { %760 = vmatpush3.xpose.msk.msra.mxu0 %vm95_vm0, %v42_v31 }
  0x26   :  { %761 = vmatprep.subr.msk.mxu0 %vm95_vm0, %v57_v33 }
  0x27   :  { %580 = vperm.xlu0 %787, %v577_v34  }
  0x29   :  { %762 = vmatpush3.xpose.msk.msra.mxu0 %vm95_vm0, %v41_v35 }
  0x2a   :  { %763 = vmatprep.subr.msk.mxu0 %vm95_vm0, %v56_v36 }
  0x2d   :  { %764 = vmatpush3.xpose.msk.msra.mxu0 %vm95_vm0, %v40_v37 }
  0x2e   :  { %765 = vmatprep.subr.msk.mxu0 %vm95_vm0, %v55_v38 }
  0x31   :  { %766 = vmatpush3.xpose.msk.msra.mxu0 %vm95_vm0, %v39_v39 }
  0x32   :  { %767 = vmatprep.subr.msk.mxu0 %vm95_vm0, %v54_v40 }
  0x35   :  { %768 = vmatpush3.xpose.msk.msra.mxu0 %vm95_vm0, %v38_v41 }
  0x36   :  { %769 = vmatprep.subr.msk.mxu0 %vm95_vm0, %v53_v42 }
  0x39   :  { %770 = vmatpush3.xpose.msk.msra.mxu0 %vm95_vm0, %v37_v43 }
  0x3a   :  { %771 = vmatprep.subr.msk.mxu0 %vm95_vm0, %v52_v44 }
  0x3d   :  { %772 = vmatpush3.xpose.msk.msra.mxu0 %vm95_vm0, %v36_v45 }
  0x3e   :  { %773 = vmatprep.subr.msk.mxu0 %vm95_vm0, %v51_v46 }
  0x41   :  { %774 = vmatpush3.xpose.msk.msra.mxu0 %vm95_vm0, %v35_v47  ;;  %v439_v47 = vld [vmem:[%s1157_s5] sm:$0xff] }
  0x44   :  { %776 = vmatmul.mubr.msk.f32.vlgmr.msra.gmra.mxu0 %vm95_vm0, %v946_v9 }
  0x45   :  { %777 = vmatprep.mubr.msk.f32.mxu0 %vm95_vm0, %v68_v48 }
  0x48   :  { %778 = vmatmul.mubr.msk.f32.gmra.mxu0 %vm95_vm0, %v68_v48 }
  0x49   :  { %779 = vmatprep.mubr.msk.f32.mxu0 %vm95_vm0, %v69_v49 }
  0x4c   :  { %780 = vmatmul.mubr.msk.f32.gmra.mxu0 %vm95_vm0, %v69_v49  ;;  %v440_v49 = vld [vmem:[%s1157_s5 + $0x8] sm:$0xff] }
  0x4d   :  { %781 = vmatprep.mubr.msk.f32.mxu0 %vm95_vm0, %v70_v50 }
  0x50   :  { %782 = vmatmul.mubr.msk.f32.gmra.mxu0 %vm95_vm0, %v70_v50  ;;  %v441_v50 = vld [vmem:[%s1157_s5 + $0x10] sm:$0xff] }
  0x81   :  { %v83_v59 = vpop.permute.xlu1 %82 }
  0x82   :  { %v93_v56 = vpop.permute.xlu0 %92 }
  0x8e   :  { %v88_v61 = vpop.permute.xlu0 %87  ;;  %v78_v3 = vpop.permute.xlu1 %77 }
  0x92   :  { %v327_v25 = vpop.permute.xlu0 %326  ;;  %v322_v27 = vpop.permute.xlu1 %321 }
  0x96   :  { %v317_v33 = vpop.permute.xlu0 %316  ;;  %v312_v36 = vpop.permute.xlu1 %311 }
 0x104   :  { %v270_v52 = vpop.f32.mrf.mxu0 }
 0x105   :  { %v271_v7 = vadd.f32 %v270_v52, %v78_v3  ;;  %v442_v52 = vld [vmem:[%s1157_s5 + $0x18] sm:$0xff] }
 0x106   :  { %v272_v53 = vpop.f32.mrf.mxu0 }
 0x107   :  { %v273_v6 = vadd.f32 %v272_v53, %v78_v3 }
 0x108   :  { %v276_v54 = vpop.f32.mrf.mxu0 }
 0x109   :  { %v277_v5 = vadd.f32 %v276_v54, %v83_v59 }
 0x10a   :  { %v278_v55 = vpop.f32.mrf.mxu0 }
 0x10b   :  { %v279_v4 = vadd.f32 %v278_v55, %v83_v59 }
 0x10c   :  { %v282_v57 = vpop.f32.mrf.mxu0 }
 0x10d   :  { %v283_v2 = vadd.f32 %v282_v57, %v88_v61 }
 0x10e   :  { %v284_v58 = vpop.f32.mrf.mxu0 }
 0x10f   :  { %v285_v0 = vadd.f32 %v284_v58, %v88_v61  ;;  %v465_v58 = vpop.permute.xlu0 %464 }
 0x110   :  { %v288_v60 = vpop.f32.mrf.mxu0 }
 0x111   :  { %v289_v62 = vadd.f32 %v288_v60, %v93_v56  ;;  %v460_v60 = vpop.permute.xlu1 %459 }
 0x112   :  { %v290_v63 = vpop.f32.mrf.mxu0 }
 0x113   :  { %v291_v1 = vadd.f32 %v290_v63, %v93_v56 }
 0x115   :  { %789 = vtanh.f32 %v291_v1 }
 0x116   :  { %791 = vtanh.f32 %v289_v62 }
 0x117   :  { %793 = vtanh.f32 %v285_v0 }
 0x118   :  { %795 = vtanh.f32 %v283_v2  ;;  %v455_v2 = vpop.permute.xlu0 %454 }
 0x119   :  { %797 = vtanh.f32 %v279_v4 }
 0x11a   :  { %799 = vtanh.f32 %v277_v5  ;;  %v450_v5 = vpop.permute.xlu1 %449 }
 0x11b   :  { %801 = vtanh.f32 %v273_v6 }
 0x11c   :  { %803 = vtanh.f32 %v271_v7 }
 0x122   :  { %v790_v8 = vpop.eup %789 }
 0x123   :  { %v792_v9 = vpop.eup %791  ;;  %366 = vmatprep.subr.mxu1 %v790_v8 }
 0x124   :  { %v794_v10 = vpop.eup %793  ;;  %367 = vmatpush1.msra.mxu1 %v792_v9 }
 0x125   :  { %v796_v11 = vpop.eup %795  ;;  %368 = vmatprep.subr.mxu1 %v794_v10 }
 0x126   :  { %v798_v12 = vpop.eup %797  ;;  %369 = vmatpush1.msra.mxu1 %v796_v11 }
 0x127   :  { %v800_v13 = vpop.eup %799  ;;  %370 = vmatprep.subr.mxu1 %v798_v12 }
 0x128   :  { %v802_v14 = vpop.eup %801  ;;  %371 = vmatpush1.msra.mxu1 %v800_v13 }
 0x129   :  { %v804_v16 = vpop.eup %803  ;;  %372 = vmatprep.subr.mxu1 %v802_v14 }
 0x12a   :  { %373 = vmatpush1.msra.mxu1 %v804_v16 }
 0x12b   :  { %734 = vmatmul.mubr.msk.f32.vlgmr.msra.gmra.mxu1 %vm329_vm1, %v301_v15  ;;  %v576_v15 = vld [vmem:[%s1159_s7] sm:$0x1]  ;;  %s862_s7 = smov [#allocation3]  }
 0x12c   :  { %412 = vmatprep.mubr.f32.mxu1 %v860_v51  ;;  %s690_s2 = sshll.u32 %s862_s7, 4  ;;  %s691_s2 = int_to_ptr.vmem [resolvable:$true] %s690_s2 }
 0x12d   :  { %s837_s24 = scalar_lea.vmem %s691_s2, 32  ;;  %p842_p1 = scmp.lt.s32.totalorder %s691_s2, %s691_s2 }
 0x12e   :  { %p838_p0 = scmp.ne.s32.totalorder %s691_s2, %s837_s24  ;;  %p843_p2 = scmp.lt.s32.totalorder %s837_s24, %s837_s24 }
 0x12f   :  { %735 = vmatmul.mubr.msk.f32.gmra.mxu1 %vm329_vm1, %v302_v17  ;;  %v583_v17 = vlaneseq }
 0x130   :  { %418 = vmatprep.mubr.f32.mxu1 %v860_v51  ;;  %p844_p3 = por %p843_p2, %p842_p1 }
 0x131   :  { %vm681_vm2 = vcmp.lt.s32.totalorder %v583_v17, 256 }
 0x132   :  { %p845_p4 = pnand %p844_p3, %p838_p0 }
 0x133   :  { %736 = vmatmul.mubr.msk.f32.gmra.mxu1 %vm329_vm1, %v303_v18  ;;  %v584_v18 = vshrl.u32 %v583_v17, 7 }
 0x134   :  { %424 = vmatprep.mubr.f32.mxu1 %v860_v51 }
 0x137   :  { %737 = vmatmul.mubr.msk.f32.gmra.mxu1 %vm329_vm1, %v304_v19  ;;  %v861_v19 = vmov 1966171168  }
 0x138   :  { %543 = vmatprep.mubr.f32.mxu1 %v860_v51 }
 0x1eb   :  { %v408_v20 = vpop.f32.mrf.mxu1 }
 0x1ec   :  { %v409_v39 = vadd.f32 %v408_v20, %v312_v36  ;;  %v665_v20 = vunpack.c.l.s4 %v861_v19 }
 0x1ed   :  { %v410_v21 = vpop.f32.mrf.mxu1 }
 0x1ee   :  { %v411_v38 = vadd.f32 %v410_v21, %v312_v36  ;;  %v585_v21 = vsub.s32 0, %v584_v18 }
 0x1ef   :  { %v414_v22 = vpop.f32.mrf.mxu1 }
 0x1f0   :  { %v415_v37 = vadd.f32 %v414_v22, %v317_v33  ;;  %v581_v22 = vpop.permute.xlu0 %580 }
 0x1f1   :  { %v416_v23 = vpop.f32.mrf.mxu1 }
 0x1f2   :  { %v417_v35 = vadd.f32 %v416_v23, %v317_v33  ;;  %v666_v23 = vunpack.c.0.s8 %v665_v20 }
 0x1f3   :  { %v420_v24 = vpop.f32.mrf.mxu1 }
 0x1f4   :  { %v421_v34 = vadd.f32 %v420_v24, %v322_v27 }
 0x1f5   :  { %v422_v26 = vpop.f32.mrf.mxu1 }
 0x1f6   :  { %v423_v31 = vadd.f32 %v422_v26, %v322_v27 }
 0x1f7   :  { %v426_v28 = vpop.f32.mrf.mxu1 }
 0x1f8   :  { %v427_v29 = vadd.f32 %v426_v28, %v327_v25 }
 0x1f9   :  { %v428_v30 = vpop.f32.mrf.mxu1 }
 0x1fa   :  { %v429_v32 = vadd.f32 %v428_v30, %v327_v25  ;;  %v586_v25 = vrot.slane %v581_v22, %v585_v21 }
 0x1fc   :  { %805 = vtanh.f32 %v429_v32 }
 0x1fd   :  { %807 = vtanh.f32 %v427_v29  ;;  %v669_v29 = vsub.s32 %v666_v23, %v584_v18 }
 0x1fe   :  { %809 = vtanh.f32 %v423_v31 }
 0x1ff   :  { %811 = vtanh.f32 %v421_v34 }
 0x200   :  { %813 = vtanh.f32 %v417_v35 }
 0x201   :  { %815 = vtanh.f32 %v415_v37 }
 0x202   :  { %817 = vtanh.f32 %v411_v38 }
 0x203   :  { %819 = vtanh.f32 %v409_v39 }
 0x209   :  { %v806_v40 = vpop.eup %805 }
 0x20a   :  { %v808_v41 = vpop.eup %807  ;;  %503 = vmatprep.subr.mxu1 %v806_v40 }
 0x20b   :  { %v810_v42 = vpop.eup %809  ;;  %504 = vmatpush1.msra.mxu1 %v808_v41 }
 0x20c   :  { %v812_v43 = vpop.eup %811  ;;  %505 = vmatprep.subr.mxu1 %v810_v42 }
 0x20d   :  { %v814_v44 = vpop.eup %813  ;;  %506 = vmatpush1.msra.mxu1 %v812_v43 }
 0x20e   :  { %v816_v45 = vpop.eup %815  ;;  %507 = vmatprep.subr.mxu1 %v814_v44 }
 0x20f   :  { %v818_v46 = vpop.eup %817  ;;  %508 = vmatpush1.msra.mxu1 %v816_v45 }
 0x210   :  { %v820_v48 = vpop.eup %819  ;;  %509 = vmatprep.subr.mxu1 %v818_v46 }
 0x211   :  { %510 = vmatpush1.msra.mxu1 %v820_v48 }
 0x212   :  { %738 = vmatmul.mubr.msk.f32.vlgmr.msra.gmra.mxu1 %vm329_vm1, %v439_v47 }
 0x213   :  { %549 = vmatprep.mubr.f32.mxu1 %v860_v51 }
 0x216   :  { %739 = vmatmul.mubr.msk.f32.gmra.mxu1 %vm329_vm1, %v440_v49 }
 0x217   :  { %555 = vmatprep.mubr.f32.mxu1 %v860_v51 }
 0x21a   :  { %740 = vmatmul.mubr.msk.f32.gmra.mxu1 %vm329_vm1, %v441_v50 }
 0x21b   :  { %561 = vmatprep.mubr.f32.mxu1 %v860_v51 }
 0x21e   :  { %741 = vmatmul.mubr.msk.f32.gmra.mxu1 %vm329_vm1, %v442_v52 }
 0x21f   :  { %654 = vmatprep.mubr.f32.mxu1 %v860_v51 }
 0x2d2   :  { %v545_v53 = vpop.f32.mrf.mxu1 }
 0x2d3   :  { %v546_v7 = vadd.f32 %v545_v53, %v450_v5 }
 0x2d4   :  { %v547_v54 = vpop.f32.mrf.mxu1 }
 0x2d5   :  { %v548_v51 = vadd.f32 %v547_v54, %v450_v5 }
 0x2d6   :  { %v551_v55 = vpop.f32.mrf.mxu1 }
 0x2d7   :  { %v552_v6 = vadd.f32 %v551_v55, %v455_v2 }
 0x2d8   :  { %v553_v56 = vpop.f32.mrf.mxu1 }
 0x2d9   :  { %v554_v4 = vadd.f32 %v553_v56, %v455_v2 }
 0x2da   :  { %v557_v57 = vpop.f32.mrf.mxu1 }
 0x2db   :  { %v558_v3 = vadd.f32 %v557_v57, %v460_v60 }
 0x2dc   :  { %v559_v59 = vpop.f32.mrf.mxu1 }
 0x2dd   :  { %v560_v0 = vadd.f32 %v559_v59, %v460_v60 }
 0x2de   :  { %v563_v61 = vpop.f32.mrf.mxu1 }
 0x2df   :  { %v564_v62 = vadd.f32 %v563_v61, %v465_v58 }
 0x2e0   :  { %v565_v63 = vpop.f32.mrf.mxu1 }
 0x2e1   :  { %v566_v1 = vadd.f32 %v565_v63, %v465_v58 }
 0x2e3   :  { %821 = vtanh.f32 %v566_v1 }
 0x2e4   :  { %823 = vtanh.f32 %v564_v62 }
 0x2e5   :  { %825 = vtanh.f32 %v560_v0 }
 0x2e6   :  { %827 = vtanh.f32 %v558_v3 }
 0x2e7   :  { %829 = vtanh.f32 %v554_v4 }
 0x2e8   :  { %831 = vtanh.f32 %v552_v6 }
 0x2e9   :  { %833 = vtanh.f32 %v548_v51 }
 0x2ea   :  { %835 = vtanh.f32 %v546_v7 }
 0x2f0   :  { %v822_v8 = vpop.eup %821 }
 0x2f1   :  { %v824_v9 = vpop.eup %823  ;;  %614 = vmatprep.subr.mxu1 %v822_v8 }
 0x2f2   :  { %v826_v10 = vpop.eup %825  ;;  %615 = vmatpush1.msra.mxu1 %v824_v9 }
 0x2f3   :  { %v828_v11 = vpop.eup %827  ;;  %616 = vmatprep.subr.mxu1 %v826_v10 }
 0x2f4   :  { %v830_v12 = vpop.eup %829  ;;  %617 = vmatpush1.msra.mxu1 %v828_v11 }
 0x2f5   :  { %v832_v13 = vpop.eup %831  ;;  %618 = vmatprep.subr.mxu1 %v830_v12 }
 0x2f6   :  { %v834_v14 = vpop.eup %833  ;;  %619 = vmatpush1.msra.mxu1 %v832_v13 }
 0x2f7   :  { %v836_v16 = vpop.eup %835  ;;  %620 = vmatprep.subr.mxu1 %v834_v14 }
 0x2f8   :  { %621 = vmatpush1.msra.mxu1 %v836_v16 }
 0x2f9   :  { %742 = vmatmul.mubr.msk.f32.vlgmr.msra.gmra.mxu1 %vm329_vm1, %v576_v15 }
 0x3b9   :  { %v656_v24 = vpop.f32.mrf.mxu1 }
 0x3ba   :  { %v657_v27 = vadd.f32 %v656_v24, %v586_v25 }
 0x3bb   :  { %v658_v26 = vpop.f32.mrf.mxu1 }
 0x3bc   :  { %v659_v28 = vadd.f32 %v658_v26, %v586_v25 }
 0x3be   :  { %v663_v30 = vcombine.low %v657_v27, %v659_v28 }
 0x3c0   :  { %v670_v31 = vrot.slane %v663_v30, %v669_v29 }
 0x3c2   :  { %v677_v32 = vrot.slane %v670_v31, %v669_v29 }
 0x3c4   :  { %683 = vst.msk [vmem:[#allocation3] sm:$0x3] %vm681_vm2, %v677_v32 }
 0x3c5   :  { %848 = shalt.err (!%p845_p4)
}
 0x3c6   :  { %693 = dma.vmem_to_hbm [thread:$0]  %s691_s2, 32, %s1161_s9, [#allocation4]  }
 0x3c7   :  { %857 = dma.done.wait [#allocation4], 32  }
 0x3c8   :  { %858 = vsyncadd [#allocation4], 4294967264 }
 0x3c9   :  { %697 = vsyncpa [#allocation4], 1 }

</bundles_post_ra>
